<compile_context>
chip_gen: v7x
topology: tpu7x:2x2x1
jax: 0.10.0
libtpu: 0.0.40
codegen_flags: <defaults>
</compile_context>

<pallas_src>
from functools import partial

import jax
import jax.numpy as jnp
from jax.experimental import pallas as pl
from jax.experimental.pallas import tpu as pltpu


def _conv_bn_relu_kernel(lhs_ref, w_ref, gb_ref, out_ref, *,
                         has_relu: bool, eps: float, inv_count: float):
    # lhs_ref: (R, Kdim)   bf16 im2col activations, R = N*H*W rows
    # w_ref:   (Kdim, Cout) bf16 dense conv weight
    # gb_ref:  (2, Cout)   f32, row 0 = gamma, row 1 = beta
    # out_ref: (R, Cout)   f32 output

    # ---- convolution: one dense bf16 MXU matmul, f32 accumulation ----
    acc = jnp.dot(lhs_ref[...], w_ref[...],
                  preferred_element_type=jnp.float32)            # (R, Cout), f32

    # ---- BatchNorm2d (training mode): biased per-channel stats over (N, H, W) ----
    # Channels live on the lane axis, so a sublane (row) reduction gives the
    # per-channel stats directly.  sum and sum-of-squares are independent of each
    # other (no mean->centered->var dependency chain); var = E[x^2] - mean^2.
    s1 = jnp.sum(acc, axis=0, keepdims=True)                     # (1, Cout)
    s2 = jnp.sum(acc * acc, axis=0, keepdims=True)               # (1, Cout)
    mean = s1 * inv_count
    var = s2 * inv_count - mean * mean                           # biased variance
    inv_std = jax.lax.rsqrt(var + eps)

    # fold normalize + affine into a single FMA
    gamma = gb_ref[0:1, :]
    beta = gb_ref[1:2, :]
    scale = gamma * inv_std                                      # (1, Cout)
    shift = beta - mean * scale
    y = acc * scale + shift

    # ---- ReLU ----
    if has_relu:
        y = jnp.maximum(y, 0.0)

    out_ref[...] = y


@partial(jax.jit, static_argnames=("has_relu", "eps"))
def conv_bn_relu(x_nchw, weight_oihw, gamma, beta, *,
                 has_relu: bool = True, eps: float = 1e-5):
    """Forward of ConvBNReLU. x_nchw: (N, Cin, H, W); weight_oihw: (Cout, Cin, 3, 3)."""
    x = x_nchw.astype(jnp.float32)
    w = weight_oihw.astype(jnp.float32)
    N, Cin, H, W = x.shape
    Cout, _, KH, KW = w.shape
    Kdim = KH * KW * Cin
    R = N * H * W

    # ---- im2col in plain JAX (layout glue stays out of the kernel) ----
    x_nhwc = jnp.transpose(x, (0, 2, 3, 1))                       # (N, H, W, Cin)
    x_pad = jnp.pad(x_nhwc, ((0, 0), (1, 1), (1, 1), (0, 0)))     # padding = 1
    cols = []
    for kh in range(KH):
        for kw in range(KW):
            cols.append(x_pad[:, kh:kh + H, kw:kw + W, :])
    patches = jnp.concatenate(cols, axis=-1)                      # (N, H, W, Kdim)
    lhs = patches.reshape(R, Kdim).astype(jnp.bfloat16)           # bf16 MXU operand

    # weight: (Cout, Cin, KH, KW) -> (Kdim, Cout), tap ordering matches `patches`
    wmat = jnp.transpose(w, (2, 3, 1, 0)).reshape(Kdim, Cout).astype(jnp.bfloat16)

    # pack BN affine params into one small array -> one DMA
    gb = jnp.stack([gamma.astype(jnp.float32), beta.astype(jnp.float32)], axis=0)

    out2d = pl.pallas_call(
        partial(_conv_bn_relu_kernel, has_relu=has_relu, eps=eps,
                inv_count=1.0 / float(R)),
        out_shape=jax.ShapeDtypeStruct((R, Cout), jnp.float32),
        in_specs=[
            pl.BlockSpec(memory_space=pltpu.MemorySpace.VMEM),  # lhs  (512, 36) bf16
            pl.BlockSpec(memory_space=pltpu.MemorySpace.VMEM),  # wmat (36, 8)   bf16
            pl.BlockSpec(memory_space=pltpu.MemorySpace.VMEM),  # gb   (2, 8)    f32
        ],
        out_specs=pl.BlockSpec(memory_space=pltpu.MemorySpace.VMEM),
        # Real footprint is < 1 MiB; do not claim all of a v7x TC's 64 MiB VMEM.
        compiler_params=pltpu.CompilerParams(vmem_limit_bytes=8 << 20),
    )(lhs, wmat, gb)

    # back to PyTorch NCHW convention
    out_nhwc = out2d.reshape(N, H, W, Cout)
    return jnp.transpose(out_nhwc, (0, 3, 1, 2))


def _reference(x, w, gamma, beta, *, has_relu=True, eps=1e-5, cast_bf16=False):
    """Plain-JAX reference (NCHW), mirroring PyTorch training-mode forward.

    With cast_bf16=True the conv operands are rounded to bf16 first, matching the
    kernel's MXU numeric path exactly (modulo f32 summation order); this enables
    a tight tolerance that catches tap-ordering / packing bugs.
    """
    if cast_bf16:
        x = x.astype(jnp.bfloat16).astype(jnp.float32)
        w = w.astype(jnp.bfloat16).astype(jnp.float32)
    y = jax.lax.conv_general_dilated(
        x, w, window_strides=(1, 1), padding=((1, 1), (1, 1)),
        dimension_numbers=("NCHW", "OIHW", "NCHW"),
        precision=jax.lax.Precision.HIGHEST)
    mean = y.mean(axis=(0, 2, 3), keepdims=True)
    var = ((y - mean) ** 2).mean(axis=(0, 2, 3), keepdims=True)
    yn = (y - mean) * jax.lax.rsqrt(var + eps)
    yn = yn * gamma.reshape(1, -1, 1, 1) + beta.reshape(1, -1, 1, 1)
    return jnp.maximum(yn, 0.0) if has_relu else yn


if __name__ == "__main__":
    # Module config: in_channel=4, out_channel=8, kernel_size=3, stride=1,
    # padding=1, dilation=1, groups=1, bias=False, has_relu=True.
    N, Cin, H, W = 2, 4, 16, 16
    Cout, K = 8, 3

    key = jax.random.PRNGKey(0)
    kx, kw, kg, kb = jax.random.split(key, 4)
    x = jax.random.normal(kx, (N, Cin, H, W), dtype=jnp.float32)
    weight = 0.1 * jax.random.normal(kw, (Cout, Cin, K, K), dtype=jnp.float32)
    # BatchNorm2d affine params (deterministic, slightly off identity init)
    gamma = 1.0 + 0.1 * jax.random.normal(kg, (Cout,), dtype=jnp.float32)
    beta = 0.1 * jax.random.normal(kb, (Cout,), dtype=jnp.float32)

    out = conv_bn_relu(x, weight, gamma, beta, has_relu=True)
    out = jax.block_until_ready(out)

    # Tight check vs a reference that matches the kernel's bf16-operand / f32-acc
    # numeric path: catches layout / tap-ordering / stats bugs.
    ref_bf16 = _reference(x, weight, gamma, beta, has_relu=True, cast_bf16=True)
    err_tight = float(jnp.max(jnp.abs(out - ref_bf16)))
    if err_tight > 1e-3:
        raise AssertionError(f"mismatch vs bf16-matched reference, max abs err = {err_tight}")

    # Looser sanity check vs the pure-f32 module semantics (error budget here is
    # dominated by the intentional bf16 rounding of the MXU operands).
    ref_f32 = _reference(x, weight, gamma, beta, has_relu=True, cast_bf16=False)
    err_f32 = float(jnp.max(jnp.abs(out - ref_f32)))
    if err_f32 > 5e-2:
        raise AssertionError(f"mismatch vs f32 reference, max abs err = {err_f32}")

    print("KERNEL_OK")
</pallas_src>

<mosaic_0001>
module attributes {stable_mosaic.version = 11 : i64} {
  func.func @_conv_bn_relu_kernel(%arg0: memref<512x36xbf16, #tpu.memory_space<vmem>>, %arg1: memref<36x8xbf16, #tpu.memory_space<vmem>>, %arg2: memref<2x8xf32, #tpu.memory_space<vmem>>, %arg3: memref<512x8xf32, #tpu.memory_space<vmem>>) attributes {dimension_semantics = [], scalar_prefetch = 0 : i64, scratch_operands = 0 : i64, tpu.core_type = #tpu.core_type<tc>} {
    %c0 = arith.constant 0 : index
    %c0_0 = arith.constant 0 : index
    %0 = vector.load %arg0[%c0, %c0_0] : memref<512x36xbf16, #tpu.memory_space<vmem>>, vector<512x36xbf16>
    %c0_1 = arith.constant 0 : index
    %c0_2 = arith.constant 0 : index
    %1 = vector.load %arg1[%c0_1, %c0_2] : memref<36x8xbf16, #tpu.memory_space<vmem>>, vector<36x8xbf16>
    %cst = arith.constant dense<0.000000e+00> : vector<512x8xf32>
    %2 = tpu.matmul %0, %1, %cst {dimension_numbers = #tpu.dot_dimension_numbers<[1], [0], [0], [1], [0, 0, 1, 1], [], []>} : vector<512x36xbf16>, vector<36x8xbf16>, vector<512x8xf32> -> vector<512x8xf32>
    %cst_3 = arith.constant dense<0.000000e+00> : vector<8xf32>
    %3 = vector.multi_reduction <add>, %2, %cst_3 [0] : vector<512x8xf32> to vector<8xf32>
    %4 = vector.shape_cast %3 : vector<8xf32> to vector<1x8xf32>
    %5 = arith.mulf %2, %2 : vector<512x8xf32>
    %cst_4 = arith.constant dense<0.000000e+00> : vector<8xf32>
    %6 = vector.multi_reduction <add>, %5, %cst_4 [0] : vector<512x8xf32> to vector<8xf32>
    %7 = vector.shape_cast %6 : vector<8xf32> to vector<1x8xf32>
    %cst_5 = arith.constant 0.001953125 : f32
    %8 = vector.broadcast %cst_5 : f32 to vector<1x8xf32>
    %9 = arith.mulf %4, %8 : vector<1x8xf32>
    %cst_6 = arith.constant 0.001953125 : f32
    %10 = vector.broadcast %cst_6 : f32 to vector<1x8xf32>
    %11 = arith.mulf %7, %10 : vector<1x8xf32>
    %12 = arith.mulf %9, %9 : vector<1x8xf32>
    %13 = arith.subf %11, %12 : vector<1x8xf32>
    %cst_7 = arith.constant 9.99999974E-6 : f32
    %14 = vector.broadcast %cst_7 : f32 to vector<1x8xf32>
    %15 = arith.addf %13, %14 : vector<1x8xf32>
    %16 = math.rsqrt %15 : vector<1x8xf32>
    %c0_8 = arith.constant 0 : index
    %c0_9 = arith.constant 0 : index
    %17 = vector.load %arg2[%c0_8, %c0_9] : memref<2x8xf32, #tpu.memory_space<vmem>>, vector<1x8xf32>
    %c1 = arith.constant 1 : index
    %c0_10 = arith.constant 0 : index
    %18 = vector.load %arg2[%c1, %c0_10] : memref<2x8xf32, #tpu.memory_space<vmem>>, vector<1x8xf32>
    %19 = arith.mulf %17, %16 : vector<1x8xf32>
    %20 = arith.mulf %9, %19 : vector<1x8xf32>
    %21 = arith.subf %18, %20 : vector<1x8xf32>
    %22 = vector.broadcast %19 : vector<1x8xf32> to vector<512x8xf32>
    %23 = arith.mulf %2, %22 : vector<512x8xf32>
    %24 = vector.broadcast %21 : vector<1x8xf32> to vector<512x8xf32>
    %25 = arith.addf %23, %24 : vector<512x8xf32>
    %cst_11 = arith.constant 0.000000e+00 : f32
    %26 = vector.broadcast %cst_11 : f32 to vector<512x8xf32>
    %27 = arith.maximumf %25, %26 : vector<512x8xf32>
    %c0_12 = arith.constant 0 : index
    %c0_13 = arith.constant 0 : index
    %28 = vector.load %arg3[%c0_12, %c0_13] : memref<512x8xf32, #tpu.memory_space<vmem>>, vector<512x8xf32>
    tpu.vector_store %arg3[%c0_12, %c0_13], %27 {strides = array<i32>} : memref<512x8xf32, #tpu.memory_space<vmem>>, vector<512x8xf32>,
    return
  }
}

</mosaic_0001>

<bundles_post_ra>
// kernel: conv_bn_relu.1
= control target key start
LH: loop header
LB: loop body
LE: loop exit
PB: predicated region body
PF: predicated region fallthrough
CT: control target
= control target key end

     0   :  { %vm259_vm0 = vcmask 293888   ;;  %vm356_vm1 = vcmask 1041408   ;;  %vm649_vm2 = vcmask 64512   ;;  %s2939_s1 = inlined_call_operand.vmem [shape: bf16[36,8], index: 1, kind: input, shape index: {}]   ;;  %s2940_s0 = inlined_call_operand.vmem [shape: bf16[512,36], index: 0, kind: input, shape index: {}]   ;;  %s2941_s2 = inlined_call_operand.vmem [shape: f32[2,8], index: 2, kind: input, shape index: {}]   ;;  %s2942_s3 = inlined_call_operand.vmem [shape: f32[512,8], index: 3, kind: output, shape index: {}]  }
   0x1   :  { %v1439_v0 = vld [vmem:[%s2939_s1] sm:$0xff]   ;;  %v1440_v1 = vld [vmem:[%s2939_s1 + $0x8] sm:$0xff]   ;;  %v1441_v2 = vld [vmem:[%s2939_s1 + $0x10] ss:$0 sps:$4 sm:$0x33]  }
   0x2   :  { %1361 = vmatprep.subr.bf16.mxu0 %v1439_v0  ;;  %v1442_v3 = vld [vmem:[%s2940_s0] sm:$0xff]   ;;  %1431 = vmatprep.subr.bf16.mxu1 %v1439_v0  ;;  %v358_v4 = vsel %vm356_vm1, %v1441_v2, 0  ;;  %v1443_v5 = vld [vmem:[%s2940_s0 + $0x8] sm:$0xff]   ;;  %v1444_v6 = vld [vmem:[%s2940_s0 + $0x10] sm:$0xff]  }
   0x3   :  { %1362 = vmatpush3.bf16.msra.mxu0 %v1439_v0  ;;  %1434 = vmatpush3.bf16.msra.mxu1 %v1439_v0  ;;  %v1445_v7 = vld [vmem:[%s2940_s0 + $0x18] sm:$0xff]   ;;  %v1446_v8 = vld [vmem:[%s2940_s0 + $0x20] sm:$0xff]   ;;  %v1459_v10 = vld [vmem:[%s2940_s0 + $0x88] sm:$0xff]  }
   0x4   :  { %1363 = vmatprep.subr.bf16.mxu0 %v1440_v1  ;;  %1367 = vmatprep.mubr.msk.bf16.mxu0 %vm259_vm0, %v1442_v3  ;;  %v1458_v9 = vld [vmem:[%s2940_s0 + $0x80] sm:$0xff]   ;;  %v1460_v11 = vld [vmem:[%s2940_s0 + $0x90] sm:$0xff]   ;;  %v1447_v12 = vld [vmem:[%s2940_s0 + $0x28] sm:$0xff]  }
   0x5   :  { %1432 = vmatprep.subr.bf16.mxu1 %v1440_v1  ;;  %1399 = vmatprep.mubr.msk.bf16.mxu1 %vm259_vm0, %v1458_v9  ;;  %v1448_v13 = vld [vmem:[%s2940_s0 + $0x30] sm:$0xff]   ;;  %v1461_v14 = vld [vmem:[%s2940_s0 + $0x98] sm:$0xff]   ;;  %v1462_v15 = vld [vmem:[%s2940_s0 + $0xa0] sm:$0xff]  }
   0x6   :  { %v1449_v16 = vld [vmem:[%s2940_s0 + $0x38] sm:$0xff]   ;;  %v1463_v17 = vld [vmem:[%s2940_s0 + $0xa8] sm:$0xff]   ;;  %v1450_v18 = vld [vmem:[%s2940_s0 + $0x40] sm:$0xff]  }
   0x7   :  { %1364 = vmatpush3.bf16.msra.mxu0 %v1440_v1  ;;  %1435 = vmatpush3.bf16.msra.mxu1 %v1440_v1  ;;  %v1464_v19 = vld [vmem:[%s2940_s0 + $0xb0] sm:$0xff]   ;;  %v1451_v20 = vld [vmem:[%s2940_s0 + $0x48] sm:$0xff]   ;;  %v1465_v21 = vld [vmem:[%s2940_s0 + $0xb8] sm:$0xff]  }
   0x8   :  { %1437 = vmatprep.subr.msk.bf16.mxu0 %vm356_vm1, %v1441_v2  ;;  %1438 = vmatprep.subr.msk.bf16.mxu1 %vm356_vm1, %v1441_v2  ;;  %v1452_v22 = vld [vmem:[%s2940_s0 + $0x50] sm:$0xff]   ;;  %v1466_v23 = vld [vmem:[%s2940_s0 + $0xc0] sm:$0xff]   ;;  %v1453_v24 = vld [vmem:[%s2940_s0 + $0x58] sm:$0xff]  }
   0x9   :  { %v1467_v25 = vld [vmem:[%s2940_s0 + $0xc8] sm:$0xff]   ;;  %v1454_v26 = vld [vmem:[%s2940_s0 + $0x60] sm:$0xff]   ;;  %v1468_v27 = vld [vmem:[%s2940_s0 + $0xd0] sm:$0xff]  }
   0xa   :  { %v1455_v28 = vld [vmem:[%s2940_s0 + $0x68] sm:$0xff]   ;;  %v1469_v29 = vld [vmem:[%s2940_s0 + $0xd8] sm:$0xff]   ;;  %v1456_v30 = vld [vmem:[%s2940_s0 + $0x70] sm:$0xff]  }
   0xb   :  { %1366 = vmatpush3.bf16.msra.mxu0 %v358_v4  ;;  %1436 = vmatpush3.bf16.msra.mxu1 %v358_v4  ;;  %v1470_v31 = vld [vmem:[%s2940_s0 + $0xe0] sm:$0xff]   ;;  %v1457_v32 = vld [vmem:[%s2940_s0 + $0x78] sm:$0xff]   ;;  %v1471_v33 = vld [vmem:[%s2940_s0 + $0xe8] sm:$0xff]  }
   0xc   :  { %v1472_v34 = vld [vmem:[%s2940_s0 + $0xf0] sm:$0xff]   ;;  %v1473_v35 = vld [vmem:[%s2940_s0 + $0xf8] sm:$0xff]  }
   0xe   :  { %1368 = vmatmul.mubr.msk.bf16.vlgmr.msra.gmra.mrb[0].mxu0 %vm259_vm0, %v1443_v5  ;;  %1400 = vmatmul.mubr.msk.bf16.vlgmr.msra.gmra.mrb[0].mxu1 %vm259_vm0, %v1459_v10 }
   0xf   :  { %1371 = vmatprep.mubr.msk.bf16.mxu0 %vm259_vm0, %v1444_v6  ;;  %1403 = vmatprep.mubr.msk.bf16.mxu1 %vm259_vm0, %v1460_v11 }
  0x16   :  { %1372 = vmatmul.mubr.msk.bf16.gmra.mrb[4].mxu0 %vm259_vm0, %v1445_v7  ;;  %1404 = vmatmul.mubr.msk.bf16.gmra.mrb[4].mxu1 %vm259_vm0, %v1461_v14 }
  0x17   :  { %1375 = vmatprep.mubr.msk.bf16.mxu0 %vm259_vm0, %v1446_v8  ;;  %1407 = vmatprep.mubr.msk.bf16.mxu1 %vm259_vm0, %v1462_v15 }
  0x1e   :  { %1376 = vmatmul.mubr.msk.bf16.gmra.mrb[8].mxu0 %vm259_vm0, %v1447_v12  ;;  %1408 = vmatmul.mubr.msk.bf16.gmra.mrb[8].mxu1 %vm259_vm0, %v1463_v17 }
  0x1f   :  { %1379 = vmatprep.mubr.msk.bf16.mxu0 %vm259_vm0, %v1448_v13  ;;  %1411 = vmatprep.mubr.msk.bf16.mxu1 %vm259_vm0, %v1464_v19 }
  0x26   :  { %1380 = vmatmul.mubr.msk.bf16.gmra.mrb[12].mxu0 %vm259_vm0, %v1449_v16  ;;  %1412 = vmatmul.mubr.msk.bf16.gmra.mrb[12].mxu1 %vm259_vm0, %v1465_v21 }
  0x27   :  { %1383 = vmatprep.mubr.msk.bf16.mxu0 %vm259_vm0, %v1450_v18  ;;  %1415 = vmatprep.mubr.msk.bf16.mxu1 %vm259_vm0, %v1466_v23 }
  0x2e   :  { %1384 = vmatmul.mubr.msk.bf16.gmra.mrb[16].mxu0 %vm259_vm0, %v1451_v20  ;;  %1416 = vmatmul.mubr.msk.bf16.gmra.mrb[16].mxu1 %vm259_vm0, %v1467_v25 }
  0x2f   :  { %1387 = vmatprep.mubr.msk.bf16.mxu0 %vm259_vm0, %v1452_v22  ;;  %1419 = vmatprep.mubr.msk.bf16.mxu1 %vm259_vm0, %v1468_v27 }
  0x36   :  { %1388 = vmatmul.mubr.msk.bf16.gmra.mrb[20].mxu0 %vm259_vm0, %v1453_v24  ;;  %1420 = vmatmul.mubr.msk.bf16.gmra.mrb[20].mxu1 %vm259_vm0, %v1469_v29 }
  0x37   :  { %1391 = vmatprep.mubr.msk.bf16.mxu0 %vm259_vm0, %v1454_v26  ;;  %1423 = vmatprep.mubr.msk.bf16.mxu1 %vm259_vm0, %v1470_v31 }
  0x3e   :  { %1392 = vmatmul.mubr.msk.bf16.gmra.mrb[24].mxu0 %vm259_vm0, %v1455_v28  ;;  %1424 = vmatmul.mubr.msk.bf16.gmra.mrb[24].mxu1 %vm259_vm0, %v1471_v33 }
  0x3f   :  { %1395 = vmatprep.mubr.msk.bf16.mxu0 %vm259_vm0, %v1456_v30  ;;  %1427 = vmatprep.mubr.msk.bf16.mxu1 %vm259_vm0, %v1472_v34 }
  0x46   :  { %1396 = vmatmul.mubr.msk.bf16.gmra.mrb[28].mxu0 %vm259_vm0, %v1457_v32  ;;  %1428 = vmatmul.mubr.msk.bf16.gmra.mrb[28].mxu1 %vm259_vm0, %v1473_v35 }
  0xe1   :  { %v1633_v36 = vpop.f32.mrb[0].mxu0  ;;  %v1662_v55 = vpop.f32.mrb[0].mxu1 }
  0xe2   :  { %v1635_v37 = vpop.f32.mrb[1].mxu0  ;;  %v785_v41 = vmul.f32 %v1633_v36, %v1633_v36  ;;  %v653_v46 = vsel %vm649_vm2, %v1633_v36, 0.0  ;;  %2968 = vst [vmem:[#allocation2_spill] sm:$0xff] %v1662_v55  ;;  %v1666_v59 = vpop.f32.mrb[1].mxu1 }
  0xe3   :  { %v783_v38 = vmul.f32 %v1635_v37, %v1635_v37  ;;  %v1639_v39 = vpop.f32.mrb[2].mxu0  ;;  %v650_v42 = vsel %vm649_vm2, %v1635_v37, 0.0  ;;  %2969 = vst [vmem:[#allocation3_spill] sm:$0xff] %v1666_v59  ;;  %v1675_v0 = vpop.f32.mrb[2].mxu1 }
  0xe4   :  { %v1641_v40 = vpop.f32.mrb[3].mxu0  ;;  %v786_v48 = vmul.f32 %v1639_v39, %v1639_v39  ;;  %v850_v52 = vsel %vm649_vm2, %v785_v41, 0.0  ;;  %v655_v53 = vsel %vm649_vm2, %v1639_v39, 0.0  ;;  %v1679_v4 = vpop.f32.mrb[3].mxu1 }
  0xe5   :  { %v651_v43 = vsel %vm649_vm2, %v1641_v40, 0.0  ;;  %v784_v44 = vmul.f32 %v1641_v40, %v1641_v40  ;;  %v847_v47 = vsel %vm649_vm2, %v783_v38, 0.0  ;;  %2970 = vst [vmem:[#allocation4_spill] sm:$0xff] %v1679_v4 }
  0xe6   :  { %v652_v45 = vadd.f32 %v651_v43, %v650_v42  ;;  %v852_v60 = vsel %vm649_vm2, %v786_v48, 0.0 }
  0xe7   :  { %v848_v49 = vsel %vm649_vm2, %v784_v44, 0.0 }
  0xe8   :  { %v654_v50 = vadd.f32 %v653_v46, %v652_v45  ;;  %v849_v51 = vadd.f32 %v848_v49, %v847_v47 }
  0xe9   :  { %v1660_v54 = vpop.f32.mrb[4].mxu0  ;;  %v1698_v19 = vpop.f32.mrb[4].mxu1 }
  0xea   :  { %v851_v56 = vadd.f32 %v850_v52, %v849_v51  ;;  %v1664_v57 = vpop.f32.mrb[5].mxu0  ;;  %v656_v58 = vadd.f32 %v655_v53, %v654_v50  ;;  %v789_v5 = vmul.f32 %v1660_v54, %v1660_v54  ;;  %v661_v11 = vsel %vm649_vm2, %v1660_v54, 0.0  ;;  %v1702_v23 = vpop.f32.mrb[5].mxu1 }
  0xeb   :  { %v657_v61 = vsel %vm649_vm2, %v1664_v57, 0.0  ;;  %v787_v62 = vmul.f32 %v1664_v57, %v1664_v57  ;;  %v1673_v63 = vpop.f32.mrb[6].mxu0  ;;  %v1711_v28 = vpop.f32.mrb[6].mxu1 }
  0xec   :  { %v658_v1 = vadd.f32 %v657_v61, %v656_v58  ;;  %v853_v2 = vadd.f32 %v852_v60, %v851_v56  ;;  %v1677_v3 = vpop.f32.mrb[7].mxu0  ;;  %v790_v12 = vmul.f32 %v1673_v63, %v1673_v63  ;;  %v858_v16 = vsel %vm649_vm2, %v789_v5, 0.0  ;;  %v1715_v32 = vpop.f32.mrb[7].mxu1 }
  0xed   :  { %v854_v6 = vsel %vm649_vm2, %v787_v62, 0.0  ;;  %v659_v7 = vsel %vm649_vm2, %v1677_v3, 0.0  ;;  %v788_v8 = vmul.f32 %v1677_v3, %v1677_v3  ;;  %v663_v17 = vsel %vm649_vm2, %v1673_v63, 0.0 }
  0xee   :  { %v855_v9 = vadd.f32 %v854_v6, %v853_v2  ;;  %v660_v10 = vadd.f32 %v659_v7, %v658_v1  ;;  %v860_v24 = vsel %vm649_vm2, %v790_v12, 0.0 }
  0xef   :  { %v856_v13 = vsel %vm649_vm2, %v788_v8, 0.0 }
  0xf0   :  { %v662_v14 = vadd.f32 %v661_v11, %v660_v10  ;;  %v857_v15 = vadd.f32 %v856_v13, %v855_v9 }
  0xf1   :  { %v1696_v18 = vpop.f32.mrb[8].mxu0  ;;  %v1734_v51 = vpop.f32.mrb[8].mxu1 }
  0xf2   :  { %v859_v20 = vadd.f32 %v858_v16, %v857_v15  ;;  %v1700_v21 = vpop.f32.mrb[9].mxu0  ;;  %v664_v22 = vadd.f32 %v663_v17, %v662_v14  ;;  %v793_v33 = vmul.f32 %v1696_v18, %v1696_v18  ;;  %v669_v43 = vsel %vm649_vm2, %v1696_v18, 0.0  ;;  %v1738_v58 = vpop.f32.mrb[9].mxu1 }
  0xf3   :  { %v665_v25 = vsel %vm649_vm2, %v1700_v21, 0.0  ;;  %v791_v26 = vmul.f32 %v1700_v21, %v1700_v21  ;;  %v1709_v27 = vpop.f32.mrb[10].mxu0  ;;  %v1747_v2 = vpop.f32.mrb[10].mxu1 }
  0xf4   :  { %v666_v29 = vadd.f32 %v665_v25, %v664_v22  ;;  %v861_v30 = vadd.f32 %v860_v24, %v859_v20  ;;  %v1713_v31 = vpop.f32.mrb[11].mxu0  ;;  %v794_v44 = vmul.f32 %v1709_v27, %v1709_v27  ;;  %v866_v48 = vsel %vm649_vm2, %v793_v33, 0.0  ;;  %v1751_v8 = vpop.f32.mrb[11].mxu1 }
  0xf5   :  { %v862_v34 = vsel %vm649_vm2, %v791_v26, 0.0  ;;  %v667_v35 = vsel %vm649_vm2, %v1713_v31, 0.0  ;;  %v792_v38 = vmul.f32 %v1713_v31, %v1713_v31  ;;  %v671_v49 = vsel %vm649_vm2, %v1709_v27, 0.0 }
  0xf6   :  { %v863_v41 = vadd.f32 %v862_v34, %v861_v30  ;;  %v668_v42 = vadd.f32 %v667_v35, %v666_v29  ;;  %v868_v60 = vsel %vm649_vm2, %v794_v44, 0.0 }
  0xf7   :  { %v864_v45 = vsel %vm649_vm2, %v792_v38, 0.0 }
  0xf8   :  { %v670_v46 = vadd.f32 %v669_v43, %v668_v42  ;;  %v865_v47 = vadd.f32 %v864_v45, %v863_v41 }
  0xf9   :  { %v1732_v50 = vpop.f32.mrb[12].mxu0  ;;  %v1770_v29 = vpop.f32.mrb[12].mxu1 }
  0xfa   :  { %v867_v52 = vadd.f32 %v866_v48, %v865_v47  ;;  %v1736_v53 = vpop.f32.mrb[13].mxu0  ;;  %v672_v56 = vadd.f32 %v671_v49, %v670_v46  ;;  %v797_v9 = vmul.f32 %v1732_v50, %v1732_v50  ;;  %v677_v15 = vsel %vm649_vm2, %v1732_v50, 0.0  ;;  %v1774_v35 = vpop.f32.mrb[13].mxu1 }
  0xfb   :  { %v673_v61 = vsel %vm649_vm2, %v1736_v53, 0.0  ;;  %v795_v62 = vmul.f32 %v1736_v53, %v1736_v53  ;;  %v1745_v1 = vpop.f32.mrb[14].mxu0  ;;  %v1783_v44 = vpop.f32.mrb[14].mxu1 }
  0xfc   :  { %v674_v5 = vadd.f32 %v673_v61, %v672_v56  ;;  %v869_v6 = vadd.f32 %v868_v60, %v867_v52  ;;  %v1749_v7 = vpop.f32.mrb[15].mxu0  ;;  %v798_v16 = vmul.f32 %v1745_v1, %v1745_v1  ;;  %v874_v24 = vsel %vm649_vm2, %v797_v9, 0.0  ;;  %v1787_v48 = vpop.f32.mrb[15].mxu1 }
  0xfd   :  { %v870_v10 = vsel %vm649_vm2, %v795_v62, 0.0  ;;  %v675_v11 = vsel %vm649_vm2, %v1749_v7, 0.0  ;;  %v796_v12 = vmul.f32 %v1749_v7, %v1749_v7  ;;  %v679_v25 = vsel %vm649_vm2, %v1745_v1, 0.0 }
  0xfe   :  { %v871_v13 = vadd.f32 %v870_v10, %v869_v6  ;;  %v676_v14 = vadd.f32 %v675_v11, %v674_v5  ;;  %v876_v38 = vsel %vm649_vm2, %v798_v16, 0.0 }
  0xff   :  { %v872_v17 = vsel %vm649_vm2, %v796_v12, 0.0 }
 0x100   :  { %v678_v20 = vadd.f32 %v677_v15, %v676_v14  ;;  %v873_v22 = vadd.f32 %v872_v17, %v871_v13 }
 0x101   :  { %v1768_v26 = vpop.f32.mrb[16].mxu0  ;;  %v1806_v15 = vpop.f32.mrb[16].mxu1 }
 0x102   :  { %2971 = vst [vmem:[#allocation5_spill] sm:$0xff] %v1768_v26  ;;  %v875_v30 = vadd.f32 %v874_v24, %v873_v22  ;;  %v1772_v33 = vpop.f32.mrb[17].mxu0  ;;  %v680_v34 = vadd.f32 %v679_v25, %v678_v20  ;;  %v801_v49 = vmul.f32 %v1768_v26, %v1768_v26  ;;  %v685_v5 = vsel %vm649_vm2, %v1768_v26, 0.0  ;;  %v1810_v22 = vpop.f32.mrb[17].mxu1 }
 0x103   :  { %v681_v41 = vsel %vm649_vm2, %v1772_v33, 0.0  ;;  %v799_v42 = vmul.f32 %v1772_v33, %v1772_v33  ;;  %v1781_v43 = vpop.f32.mrb[18].mxu0 }
 0x104   :  { %2972 = vst [vmem:[#allocation6_spill] sm:$0xff] %v1781_v43  ;;  %v682_v45 = vadd.f32 %v681_v41, %v680_v34  ;;  %v877_v46 = vadd.f32 %v876_v38, %v875_v30  ;;  %v1785_v47 = vpop.f32.mrb[19].mxu0  ;;  %v802_v6 = vmul.f32 %v1781_v43, %v1781_v43  ;;  %v882_v12 = vsel %vm649_vm2, %v801_v49, 0.0  ;;  %v1819_v38 = vpop.f32.mrb[18].mxu1 }
 0x105   :  { %2973 = vst [vmem:[#allocation7_spill] sm:$0xff] %v1785_v47  ;;  %v878_v52 = vsel %vm649_vm2, %v799_v42, 0.0  ;;  %v683_v56 = vsel %vm649_vm2, %v1785_v47, 0.0  ;;  %v800_v60 = vmul.f32 %v1785_v47, %v1785_v47  ;;  %v687_v13 = vsel %vm649_vm2, %v1781_v43, 0.0 }
 0x106   :  { %v879_v61 = vadd.f32 %v878_v52, %v877_v46  ;;  %v684_v62 = vadd.f32 %v683_v56, %v682_v45  ;;  %v884_v24 = vsel %vm649_vm2, %v802_v6, 0.0  ;;  %v1823_v46 = vpop.f32.mrb[19].mxu1 }
 0x107   :  { %v880_v9 = vsel %vm649_vm2, %v800_v60, 0.0 }
 0x108   :  { %v686_v10 = vadd.f32 %v685_v5, %v684_v62  ;;  %v881_v11 = vadd.f32 %v880_v9, %v879_v61 }
 0x109   :  { %v1804_v14 = vpop.f32.mrb[20].mxu0 }
 0x10a   :  { %2974 = vst [vmem:[#allocation8_spill] sm:$0xff] %v1804_v14  ;;  %v883_v16 = vadd.f32 %v882_v12, %v881_v11  ;;  %v1808_v17 = vpop.f32.mrb[21].mxu0  ;;  %v688_v20 = vadd.f32 %v687_v13, %v686_v10  ;;  %v805_v49 = vmul.f32 %v1804_v14, %v1804_v14  ;;  %v693_v5 = vsel %vm649_vm2, %v1804_v14, 0.0 }
 0x10b   :  { %2975 = vst [vmem:[#allocation9_spill] sm:$0xff] %v1808_v17  ;;  %v689_v25 = vsel %vm649_vm2, %v1808_v17, 0.0  ;;  %v803_v30 = vmul.f32 %v1808_v17, %v1808_v17  ;;  %v1817_v34 = vpop.f32.mrb[22].mxu0 }
 0x10c   :  { %2976 = vst [vmem:[#allocation10_spill] sm:$0xff] %v1817_v34  ;;  %v690_v41 = vadd.f32 %v689_v25, %v688_v20  ;;  %v885_v42 = vadd.f32 %v884_v24, %v883_v16  ;;  %v1821_v45 = vpop.f32.mrb[23].mxu0  ;;  %v806_v6 = vmul.f32 %v1817_v34, %v1817_v34  ;;  %v890_v12 = vsel %vm649_vm2, %v805_v49, 0.0  ;;  %v1842_v20 = vpop.f32.mrb[20].mxu1 }
 0x10d   :  { %2977 = vst [vmem:[#allocation11_spill] sm:$0xff] %v1821_v45  ;;  %v886_v52 = vsel %vm649_vm2, %v803_v30, 0.0  ;;  %v691_v56 = vsel %vm649_vm2, %v1821_v45, 0.0  ;;  %v804_v60 = vmul.f32 %v1821_v45, %v1821_v45  ;;  %v695_v13 = vsel %vm649_vm2, %v1817_v34, 0.0 }
 0x10e   :  { %v887_v61 = vadd.f32 %v886_v52, %v885_v42  ;;  %v692_v62 = vadd.f32 %v691_v56, %v690_v41  ;;  %v1846_v41 = vpop.f32.mrb[21].mxu1  ;;  %v892_v42 = vsel %vm649_vm2, %v806_v6, 0.0 }
 0x10f   :  { %v888_v9 = vsel %vm649_vm2, %v804_v60, 0.0  ;;  %v1855_v60 = vpop.f32.mrb[22].mxu1 }
 0x110   :  { %v694_v10 = vadd.f32 %v693_v5, %v692_v62  ;;  %v889_v11 = vadd.f32 %v888_v9, %v887_v61  ;;  %v1859_v9 = vpop.f32.mrb[23].mxu1 }
 0x111   :  { %v1840_v16 = vpop.f32.mrb[24].mxu0 }
 0x112   :  { %2978 = vst [vmem:[#allocation12_spill] sm:$0xff] %v1840_v16  ;;  %v891_v24 = vadd.f32 %v890_v12, %v889_v11  ;;  %v1844_v25 = vpop.f32.mrb[25].mxu0  ;;  %v696_v30 = vadd.f32 %v695_v13, %v694_v10  ;;  %v809_v10 = vmul.f32 %v1840_v16, %v1840_v16 }
 0x113   :  { %2979 = vst [vmem:[#allocation13_spill] sm:$0xff] %v1844_v25  ;;  %v697_v52 = vsel %vm649_vm2, %v1844_v25, 0.0  ;;  %v807_v49 = vmul.f32 %v1844_v25, %v1844_v25  ;;  %v1853_v56 = vpop.f32.mrb[26].mxu0 }
 0x114   :  { %2980 = vst [vmem:[#allocation14_spill] sm:$0xff] %v1853_v56  ;;  %v698_v61 = vadd.f32 %v697_v52, %v696_v30  ;;  %v893_v62 = vadd.f32 %v892_v42, %v891_v24  ;;  %v1857_v5 = vpop.f32.mrb[27].mxu0  ;;  %v701_v24 = vsel %vm649_vm2, %v1840_v16, 0.0  ;;  %v810_v30 = vmul.f32 %v1853_v56, %v1853_v56 }
 0x115   :  { %2981 = vst [vmem:[#allocation15_spill] sm:$0xff] %v1857_v5  ;;  %v894_v6 = vsel %vm649_vm2, %v807_v49, 0.0  ;;  %v699_v11 = vsel %vm649_vm2, %v1857_v5, 0.0  ;;  %v808_v12 = vmul.f32 %v1857_v5, %v1857_v5  ;;  %v898_v49 = vsel %vm649_vm2, %v809_v10, 0.0  ;;  %v1878_v5 = vpop.f32.mrb[24].mxu1 }
 0x116   :  { %v895_v13 = vadd.f32 %v894_v6, %v893_v62  ;;  %v700_v25 = vadd.f32 %v699_v11, %v698_v61  ;;  %v703_v14 = vsel %vm649_vm2, %v1853_v56, 0.0  ;;  %2983 = vst [vmem:[#allocation17_spill] sm:$0xff] %v1878_v5  ;;  %v1882_v11 = vpop.f32.mrb[25].mxu1  ;;  %v900_v16 = vsel %vm649_vm2, %v810_v30, 0.0 }
 0x117   :  { %v896_v42 = vsel %vm649_vm2, %v808_v12, 0.0 }
 0x118   :  { %v702_v52 = vadd.f32 %v701_v24, %v700_v25  ;;  %v897_v34 = vadd.f32 %v896_v42, %v895_v13  ;;  %v1891_v13 = vpop.f32.mrb[26].mxu1 }
 0x119   :  { %v1876_v45 = vpop.f32.mrb[28].mxu0  ;;  %2986 = vst [vmem:[#allocation20_spill] sm:$0xff] %v1891_v13 }
 0x11a   :  { %2982 = vst [vmem:[#allocation16_spill] sm:$0xff] %v1876_v45  ;;  %v899_v61 = vadd.f32 %v898_v49, %v897_v34  ;;  %v1880_v62 = vpop.f32.mrb[29].mxu0  ;;  %v704_v6 = vadd.f32 %v703_v14, %v702_v52  ;;  %v1895_v49 = vpop.f32.mrb[27].mxu1  ;;  %v813_v14 = vmul.f32 %v1876_v45, %v1876_v45 }
 0x11b   :  { %2984 = vst [vmem:[#allocation18_spill] sm:$0xff] %v1880_v62  ;;  %v705_v25 = vsel %vm649_vm2, %v1880_v62, 0.0  ;;  %v811_v10 = vmul.f32 %v1880_v62, %v1880_v62  ;;  %v1889_v12 = vpop.f32.mrb[30].mxu0 }
 0x11c   :  { %2985 = vst [vmem:[#allocation19_spill] sm:$0xff] %v1889_v12  ;;  %v706_v24 = vadd.f32 %v705_v25, %v704_v6  ;;  %v901_v42 = vadd.f32 %v900_v16, %v899_v61  ;;  %v1893_v34 = vpop.f32.mrb[31].mxu0  ;;  %v709_v16 = vsel %vm649_vm2, %v1876_v45, 0.0  ;;  %v814_v61 = vmul.f32 %v1889_v12, %v1889_v12 }
 0x11d   :  { %2987 = vst [vmem:[#allocation21_spill] sm:$0xff] %v1893_v34  ;;  %v902_v30 = vsel %vm649_vm2, %v811_v10, 0.0  ;;  %v707_v52 = vsel %vm649_vm2, %v1893_v34, 0.0  ;;  %v812_v62 = vmul.f32 %v1893_v34, %v1893_v34  ;;  %v815_v25 = vmul.f32 %v1666_v59, %v1666_v59 }
 0x11e   :  { %v903_v56 = vadd.f32 %v902_v30, %v901_v42  ;;  %v708_v17 = vadd.f32 %v707_v52, %v706_v24  ;;  %v906_v26 = vsel %vm649_vm2, %v813_v14, 0.0  ;;  %v711_v34 = vsel %vm649_vm2, %v1889_v12, 0.0  ;;  %v1916_v42 = vpop.f32.mrb[28].mxu1 }
 0x11f   :  { %v904_v6 = vsel %vm649_vm2, %v812_v62, 0.0  ;;  %v713_v24 = vsel %vm649_vm2, %v1666_v59, 0.0  ;;  %2988 = vst [vmem:[#allocation22_spill] sm:$0xff] %v1916_v42  ;;  %v1918_v45 = vpop.f32.mrb[29].mxu1  ;;  %v908_v62 = vsel %vm649_vm2, %v814_v61, 0.0  ;;  %v910_v47 = vsel %vm649_vm2, %v815_v25, 0.0 }
 0x120   :  { %v710_v10 = vadd.f32 %v709_v16, %v708_v17  ;;  %v905_v43 = vadd.f32 %v904_v6, %v903_v56  ;;  %2989 = vst [vmem:[#allocation23_spill] sm:$0xff] %v1918_v45  ;;  %v816_v17 = vmul.f32 %v1679_v4, %v1679_v4  ;;  %v1924_v56 = vpop.f32.mrb[30].mxu1  ;;  %v817_v59 = vmul.f32 %v1662_v55, %v1662_v55 }
 0x121   :  { %2990 = vst [vmem:[#allocation24_spill] sm:$0xff] %v1924_v56  ;;  %v1926_v6 = vpop.f32.mrb[31].mxu1  ;;  %v717_v61 = vsel %vm649_vm2, %v1662_v55, 0.0  ;;  %v818_v25 = vmul.f32 %v1675_v0, %v1675_v0 }
 0x122   :  { %v907_v30 = vadd.f32 %v906_v26, %v905_v43  ;;  %v712_v52 = vadd.f32 %v711_v34, %v710_v10  ;;  %2991 = vst [vmem:[#allocation25_spill] sm:$0xff] %v1926_v6  ;;  %v715_v26 = vsel %vm649_vm2, %v1679_v4, 0.0  ;;  %v912_v10 = vsel %vm649_vm2, %v816_v17, 0.0 }
 0x123   :  { %v719_v4 = vsel %vm649_vm2, %v1675_v0, 0.0  ;;  %v820_v17 = vmul.f32 %v1715_v32, %v1715_v32 }
 0x124   :  { %v714_v14 = vadd.f32 %v713_v24, %v712_v52  ;;  %v909_v16 = vadd.f32 %v908_v62, %v907_v30  ;;  %v819_v24 = vmul.f32 %v1702_v23, %v1702_v23  ;;  %v914_v62 = vsel %vm649_vm2, %v817_v59, 0.0 }
 0x125   :  { %v821_v59 = vmul.f32 %v1698_v19, %v1698_v19 }
 0x126   :  { %v911_v43 = vadd.f32 %v910_v47, %v909_v16  ;;  %v716_v34 = vadd.f32 %v715_v26, %v714_v14  ;;  %v721_v47 = vsel %vm649_vm2, %v1702_v23, 0.0  ;;  %v916_v26 = vsel %vm649_vm2, %v818_v25, 0.0 }
 0x127   :  { %v918_v55 = vsel %vm649_vm2, %v819_v24, 0.0  ;;  %v822_v25 = vmul.f32 %v1711_v28, %v1711_v28  ;;  %v920_v24 = vsel %vm649_vm2, %v820_v17, 0.0  ;;  %v824_v17 = vmul.f32 %v1751_v8, %v1751_v8 }
 0x128   :  { %v718_v30 = vadd.f32 %v717_v61, %v716_v34  ;;  %v913_v52 = vadd.f32 %v912_v10, %v911_v43  ;;  %v723_v43 = vsel %vm649_vm2, %v1715_v32, 0.0 }
 0x12a   :  { %v915_v14 = vadd.f32 %v914_v62, %v913_v52  ;;  %v720_v16 = vadd.f32 %v719_v4, %v718_v30  ;;  %v725_v4 = vsel %vm649_vm2, %v1698_v19, 0.0  ;;  %v823_v30 = vmul.f32 %v1738_v58, %v1738_v58 }
 0x12c   :  { %v722_v12 = vadd.f32 %v721_v47, %v720_v16  ;;  %v917_v34 = vadd.f32 %v916_v26, %v915_v14  ;;  %v922_v47 = vsel %vm649_vm2, %v821_v59, 0.0  ;;  %v727_v14 = vsel %vm649_vm2, %v1711_v28, 0.0 }
 0x12d   :  { %v924_v26 = vsel %vm649_vm2, %v822_v25, 0.0  ;;  %v825_v59 = vmul.f32 %v1734_v51, %v1734_v51  ;;  %v826_v25 = vmul.f32 %v1747_v2, %v1747_v2 }
 0x12e   :  { %v919_v61 = vadd.f32 %v918_v55, %v917_v34  ;;  %v724_v10 = vadd.f32 %v723_v43, %v722_v12  ;;  %v729_v55 = vsel %vm649_vm2, %v1738_v58, 0.0  ;;  %v926_v34 = vsel %vm649_vm2, %v823_v30, 0.0 }
 0x12f   :  { %v928_v30 = vsel %vm649_vm2, %v824_v17, 0.0  ;;  %v828_v17 = vmul.f32 %v1787_v48, %v1787_v48 }
 0x130   :  { %v726_v52 = vadd.f32 %v725_v4, %v724_v10  ;;  %v921_v62 = vadd.f32 %v920_v24, %v919_v61  ;;  %v731_v61 = vsel %vm649_vm2, %v1751_v8, 0.0 }
 0x132   :  { %v923_v12 = vadd.f32 %v922_v47, %v921_v62  ;;  %v728_v16 = vadd.f32 %v727_v14, %v726_v52  ;;  %v733_v52 = vsel %vm649_vm2, %v1734_v51, 0.0  ;;  %v827_v62 = vmul.f32 %v1774_v35, %v1774_v35 }
 0x134   :  { %v730_v43 = vadd.f32 %v729_v55, %v728_v16  ;;  %v925_v10 = vadd.f32 %v924_v26, %v923_v12  ;;  %v930_v55 = vsel %vm649_vm2, %v825_v59, 0.0  ;;  %v735_v12 = vsel %vm649_vm2, %v1747_v2, 0.0 }
 0x135   :  { %v737_v16 = vsel %vm649_vm2, %v1774_v35, 0.0  ;;  %v829_v59 = vmul.f32 %v1770_v29, %v1770_v29 }
 0x136   :  { %v927_v4 = vadd.f32 %v926_v34, %v925_v10  ;;  %v732_v24 = vadd.f32 %v731_v61, %v730_v43  ;;  %v932_v43 = vsel %vm649_vm2, %v826_v25, 0.0  ;;  %v934_v10 = vsel %vm649_vm2, %v827_v62, 0.0 }
 0x137   :  { %v830_v25 = vmul.f32 %v1783_v44, %v1783_v44  ;;  %v936_v62 = vsel %vm649_vm2, %v828_v17, 0.0  ;;  %v832_v17 = vmul.f32 %v1823_v46, %v1823_v46 }
 0x138   :  { %v734_v47 = vadd.f32 %v733_v52, %v732_v24  ;;  %v929_v14 = vadd.f32 %v928_v30, %v927_v4  ;;  %v739_v4 = vsel %vm649_vm2, %v1787_v48, 0.0 }
 0x13a   :  { %v931_v26 = vadd.f32 %v930_v55, %v929_v14  ;;  %v736_v34 = vadd.f32 %v735_v12, %v734_v47  ;;  %v741_v47 = vsel %vm649_vm2, %v1770_v29, 0.0  ;;  %v831_v14 = vmul.f32 %v1810_v22, %v1810_v22 }
 0x13c   :  { %v738_v61 = vadd.f32 %v737_v16, %v736_v34  ;;  %v933_v24 = vadd.f32 %v932_v43, %v931_v26  ;;  %v938_v16 = vsel %vm649_vm2, %v829_v59, 0.0  ;;  %v743_v26 = vsel %vm649_vm2, %v1783_v44, 0.0 }
 0x13d   :  { %v745_v34 = vsel %vm649_vm2, %v1810_v22, 0.0  ;;  %v833_v59 = vmul.f32 %v1806_v15, %v1806_v15 }
 0x13e   :  { %v935_v52 = vadd.f32 %v934_v10, %v933_v24  ;;  %v740_v30 = vadd.f32 %v739_v4, %v738_v61  ;;  %v940_v61 = vsel %vm649_vm2, %v830_v25, 0.0  ;;  %v942_v24 = vsel %vm649_vm2, %v831_v14, 0.0 }
 0x13f   :  { %v834_v25 = vmul.f32 %v1819_v38, %v1819_v38  ;;  %v944_v14 = vsel %vm649_vm2, %v832_v17, 0.0  ;;  %v836_v17 = vmul.f32 %v1859_v9, %v1859_v9 }
 0x140   :  { %v742_v55 = vadd.f32 %v741_v47, %v740_v30  ;;  %v937_v12 = vadd.f32 %v936_v62, %v935_v52  ;;  %v747_v52 = vsel %vm649_vm2, %v1823_v46, 0.0 }
 0x142   :  { %v939_v43 = vadd.f32 %v938_v16, %v937_v12  ;;  %v744_v10 = vadd.f32 %v743_v26, %v742_v55  ;;  %v749_v55 = vsel %vm649_vm2, %v1806_v15, 0.0  ;;  %v835_v12 = vmul.f32 %v1846_v41, %v1846_v41 }
 0x144   :  { %v746_v4 = vadd.f32 %v745_v34, %v744_v10  ;;  %v941_v30 = vadd.f32 %v940_v61, %v939_v43  ;;  %v946_v34 = vsel %vm649_vm2, %v833_v59, 0.0  ;;  %v751_v43 = vsel %vm649_vm2, %v1819_v38, 0.0 }
 0x145   :  { %v753_v10 = vsel %vm649_vm2, %v1846_v41, 0.0  ;;  %v837_v59 = vmul.f32 %v1842_v20, %v1842_v20 }
 0x146   :  { %v943_v47 = vadd.f32 %v942_v24, %v941_v30  ;;  %v748_v62 = vadd.f32 %v747_v52, %v746_v4  ;;  %v948_v4 = vsel %vm649_vm2, %v834_v25, 0.0  ;;  %v950_v30 = vsel %vm649_vm2, %v835_v12, 0.0 }
 0x147   :  { %v838_v25 = vmul.f32 %v1855_v60, %v1855_v60  ;;  %v952_v12 = vsel %vm649_vm2, %v836_v17, 0.0  ;;  %v840_v17 = vmul.f32 %v1895_v49, %v1895_v49 }
 0x148   :  { %v750_v16 = vadd.f32 %v749_v55, %v748_v62  ;;  %v945_v26 = vadd.f32 %v944_v14, %v943_v47  ;;  %v755_v47 = vsel %vm649_vm2, %v1859_v9, 0.0 }
 0x14a   :  { %v947_v61 = vadd.f32 %v946_v34, %v945_v26  ;;  %v752_v24 = vadd.f32 %v751_v43, %v750_v16  ;;  %v757_v16 = vsel %vm649_vm2, %v1842_v20, 0.0  ;;  %v839_v26 = vmul.f32 %v1882_v11, %v1882_v11 }
 0x14c   :  { %v754_v52 = vadd.f32 %v753_v10, %v752_v24  ;;  %v949_v62 = vadd.f32 %v948_v4, %v947_v61  ;;  %v954_v10 = vsel %vm649_vm2, %v837_v59, 0.0  ;;  %v759_v61 = vsel %vm649_vm2, %v1855_v60, 0.0 }
 0x14d   :  { %v761_v24 = vsel %vm649_vm2, %v1882_v11, 0.0  ;;  %v841_v59 = vmul.f32 %v1878_v5, %v1878_v5 }
 0x14e   :  { %v951_v55 = vadd.f32 %v950_v30, %v949_v62  ;;  %v756_v14 = vadd.f32 %v755_v47, %v754_v52  ;;  %v956_v52 = vsel %vm649_vm2, %v838_v25, 0.0  ;;  %v958_v62 = vsel %vm649_vm2, %v839_v26, 0.0 }
 0x14f   :  { %v842_v25 = vmul.f32 %v1891_v13, %v1891_v13  ;;  %v960_v26 = vsel %vm649_vm2, %v840_v17, 0.0  ;;  %v844_v17 = vmul.f32 %v1926_v6, %v1926_v6 }
 0x150   :  { %v758_v34 = vadd.f32 %v757_v16, %v756_v14  ;;  %v953_v43 = vadd.f32 %v952_v12, %v951_v55  ;;  %v763_v55 = vsel %vm649_vm2, %v1895_v49, 0.0 }
 0x152   :  { %v955_v4 = vadd.f32 %v954_v10, %v953_v43  ;;  %v760_v30 = vadd.f32 %v759_v61, %v758_v34  ;;  %v765_v34 = vsel %vm649_vm2, %v1878_v5, 0.0  ;;  %v843_v43 = vmul.f32 %v1918_v45, %v1918_v45 }
 0x154   :  { %v762_v47 = vadd.f32 %v761_v24, %v760_v30  ;;  %v957_v14 = vadd.f32 %v956_v52, %v955_v4  ;;  %v962_v24 = vsel %vm649_vm2, %v841_v59, 0.0  ;;  %v767_v4 = vsel %vm649_vm2, %v1891_v13, 0.0 }
 0x155   :  { %v769_v30 = vsel %vm649_vm2, %v1918_v45, 0.0  ;;  %v845_v59 = vmul.f32 %v1916_v42, %v1916_v42 }
 0x156   :  { %v959_v16 = vadd.f32 %v958_v62, %v957_v14  ;;  %v764_v12 = vadd.f32 %v763_v55, %v762_v47  ;;  %v964_v47 = vsel %vm649_vm2, %v842_v25, 0.0  ;;  %v966_v14 = vsel %vm649_vm2, %v843_v43, 0.0 }
 0x157   :  { %v846_v25 = vmul.f32 %v1924_v56, %v1924_v56  ;;  %v968_v43 = vsel %vm649_vm2, %v844_v17, 0.0 }
 0x158   :  { %v766_v10 = vadd.f32 %v765_v34, %v764_v12  ;;  %v961_v61 = vadd.f32 %v960_v26, %v959_v16  ;;  %v771_v16 = vsel %vm649_vm2, %v1926_v6, 0.0 }
 0x15a   :  { %v963_v52 = vadd.f32 %v962_v24, %v961_v61  ;;  %v768_v62 = vadd.f32 %v767_v4, %v766_v10  ;;  %v773_v10 = vsel %vm649_vm2, %v1916_v42, 0.0  ;;  %v970_v4 = vsel %vm649_vm2, %v845_v59, 0.0 }
 0x15c   :  { %v770_v55 = vadd.f32 %v769_v30, %v768_v62  ;;  %v965_v12 = vadd.f32 %v964_v47, %v963_v52  ;;  %v775_v30 = vsel %vm649_vm2, %v1924_v56, 0.0  ;;  %v972_v47 = vsel %vm649_vm2, %v846_v25, 0.0 }
 0x15d   :  { %v991_v25 = vlaneseq }
 0x15e   :  { %v967_v34 = vadd.f32 %v966_v14, %v965_v12  ;;  %v772_v26 = vadd.f32 %v771_v16, %v770_v55 }
 0x160   :  { %v774_v61 = vadd.f32 %v773_v10, %v772_v26  ;;  %v969_v24 = vadd.f32 %v968_v43, %v967_v34 }
 0x162   :  { %v776_v52 = vadd.f32 %v775_v30, %v774_v61  ;;  %v971_v62 = vadd.f32 %v970_v4, %v969_v24  ;;  %v2081_v4 = vshrl.u32 %v991_v25, 7  ;;  %v986_v30 = vld [vmem:[%s2941_s2] sm:$0x1]  ;;  %v2999_v25 = vld [vmem:[#allocation13_spill] sm:$0xff] }
 0x164   :  { %v777_v14 = vrot.slane %v776_v52, 4  ;;  %v973_v55 = vadd.f32 %v972_v47, %v971_v62 }
 0x166   :  { %v778_v12 = vadd.f32 %v777_v14, %v776_v52  ;;  %v974_v16 = vrot.slane %v973_v55, 4 }
 0x168   :  { %v779_v42 = vrot.slane %v778_v12, 2  ;;  %v975_v6 = vadd.f32 %v974_v16, %v973_v55  ;;  %v2992_v16 = vld [vmem:[#allocation7_spill] sm:$0xff] }
 0x16a   :  { %v780_v45 = vadd.f32 %v779_v42, %v778_v12  ;;  %v976_v13 = vrot.slane %v975_v6, 2  ;;  %v2967_v42 = vsub.s32 0, %v2081_v4 }
 0x16c   :  { %v781_v17 = vrot.slane %v780_v45, 1  ;;  %v977_v26 = vadd.f32 %v976_v13, %v975_v6 }
 0x16e   :  { %v782_v34 = vadd.f32 %v781_v17, %v780_v45  ;;  %v978_v10 = vrot.slane %v977_v26, 1  ;;  %v2090_v45 = vld [vmem:[%s2941_s2 + $0x1] sm:$0x1]  ;;  %v2993_v17 = vld [vmem:[#allocation5_spill] sm:$0xff] }
 0x170   :  { %v979_v59 = vadd.f32 %v978_v10, %v977_v26  ;;  %v980_v43 = vmul.f32 0.001953125, %v782_v34  ;;  %v2994_v26 = vld [vmem:[#allocation6_spill] sm:$0xff]  ;;  %v2995_v34 = vld [vmem:[#allocation9_spill] sm:$0xff]  ;;  %v2996_v10 = vld [vmem:[#allocation11_spill] sm:$0xff] }
 0x172   :  { %v981_v5 = vmul.f32 0.001953125, %v979_v59  ;;  %v982_v56 = vmul.f32 %v980_v43, %v980_v43  ;;  %v2997_v59 = vld [vmem:[#allocation8_spill] sm:$0xff] }
 0x174   :  { %v983_v61 = vsub.f32 %v981_v5, %v982_v56  ;;  %v3008_v56 = vld [vmem:[#allocation16_spill] sm:$0xff] }
 0x176   :  { %v984_v24 = vadd.f32 1e-05, %v983_v61  ;;  %v2998_v61 = vld [vmem:[#allocation10_spill] sm:$0xff] }
 0x178   :  { %1474 = vrsqrt.f32 %v984_v24 }
 0x182   :  { %v1475_v52 = vpop.eup %1474 }
 0x183   :  { %v988_v13 = vmul.f32 %v1475_v52, %v986_v30  ;;  %v3000_v52 = vld [vmem:[#allocation15_spill] sm:$0xff] }
 0x185   :  { %v2092_v6 = vmul.f32 %v988_v13, %v980_v43  ;;  %v2096_v5 = vrot.slane %v988_v13, %v2967_v42  ;;  %v3009_v42 = vld [vmem:[#allocation19_spill] sm:$0xff] }
 0x187   :  { %v2102_v62 = vmul.f32 %v2096_v5, %v1635_v37  ;;  %v2106_v47 = vmul.f32 %v2096_v5, %v1641_v40  ;;  %v2110_v14 = vmul.f32 %v1633_v36, %v2096_v5  ;;  %v2114_v55 = vmul.f32 %v1639_v39, %v2096_v5 }
 0x188   :  { %v2118_v12 = vmul.f32 %v2096_v5, %v1664_v57  ;;  %v2122_v37 = vmul.f32 %v2096_v5, %v1677_v3  ;;  %v2126_v40 = vmul.f32 %v1660_v54, %v2096_v5  ;;  %v2130_v36 = vmul.f32 %v1673_v63, %v2096_v5 }
 0x189   :  { %v2134_v39 = vmul.f32 %v2096_v5, %v1700_v21  ;;  %v2138_v57 = vmul.f32 %v2096_v5, %v1713_v31  ;;  %v2142_v3 = vmul.f32 %v1696_v18, %v2096_v5  ;;  %v2146_v54 = vmul.f32 %v1709_v27, %v2096_v5 }
 0x18a   :  { %v2150_v63 = vmul.f32 %v2096_v5, %v1736_v53  ;;  %v2154_v21 = vmul.f32 %v2096_v5, %v1749_v7  ;;  %v2158_v31 = vmul.f32 %v1732_v50, %v2096_v5  ;;  %v2162_v18 = vmul.f32 %v1745_v1, %v2096_v5 }
 0x18b   :  { %v2166_v27 = vmul.f32 %v2096_v5, %v1772_v33  ;;  %v2170_v53 = vmul.f32 %v2096_v5, %v2992_v16  ;;  %v2174_v7 = vmul.f32 %v2993_v17, %v2096_v5  ;;  %v2178_v50 = vmul.f32 %v2994_v26, %v2096_v5  ;;  %v3001_v16 = vld [vmem:[#allocation12_spill] sm:$0xff]  ;;  %v3003_v26 = vld [vmem:[#allocation14_spill] sm:$0xff] }
 0x18c   :  { %v2182_v1 = vmul.f32 %v2096_v5, %v2995_v34  ;;  %v2186_v33 = vmul.f32 %v2096_v5, %v2996_v10  ;;  %v2190_v43 = vmul.f32 %v2997_v59, %v2096_v5  ;;  %v2194_v24 = vmul.f32 %v2998_v61, %v2096_v5  ;;  %v3005_v10 = vld [vmem:[#allocation18_spill] sm:$0xff]  ;;  %v3007_v61 = vld [vmem:[#allocation21_spill] sm:$0xff] }
 0x18d   :  { %v2198_v30 = vmul.f32 %v2096_v5, %v2999_v25  ;;  %v2202_v13 = vmul.f32 %v2096_v5, %v3000_v52  ;;  %v2206_v17 = vmul.f32 %v3001_v16, %v2096_v5  ;;  %v2210_v34 = vmul.f32 %v3003_v26, %v2096_v5 }
 0x18e   :  { %v2214_v59 = vmul.f32 %v2096_v5, %v3005_v10  ;;  %v2218_v25 = vmul.f32 %v2096_v5, %v3007_v61  ;;  %v2222_v52 = vmul.f32 %v3008_v56, %v2096_v5  ;;  %v2226_v16 = vmul.f32 %v3009_v42, %v2096_v5 }
 0x18f   :  { %3002 = vst [vmem:[#allocation7_spill] sm:$0xff] %v2206_v17  ;;  %3004 = vst [vmem:[#allocation5_spill] sm:$0xff] %v2210_v34  ;;  %v3010_v17 = vld [vmem:[#allocation3_spill] sm:$0xff]  ;;  %v3011_v34 = vld [vmem:[#allocation4_spill] sm:$0xff]  ;;  %v2242_v56 = vmul.f32 %v1675_v0, %v2096_v5  ;;  %v2246_v42 = vmul.f32 %v2096_v5, %v1702_v23  ;;  %v2262_v0 = vmul.f32 %v2096_v5, %v1738_v58 }
 0x190   :  { %3006 = vst [vmem:[#allocation6_spill] sm:$0xff] %v2214_v59  ;;  %v2230_v26 = vmul.f32 %v2096_v5, %v3010_v17  ;;  %v2234_v10 = vmul.f32 %v2096_v5, %v3011_v34  ;;  %v3012_v59 = vld [vmem:[#allocation2_spill] sm:$0xff]  ;;  %v2250_v17 = vmul.f32 %v2096_v5, %v1715_v32  ;;  %v2254_v34 = vmul.f32 %v1698_v19, %v2096_v5 }
 0x191   :  { %v2238_v61 = vmul.f32 %v3012_v59, %v2096_v5  ;;  %v2258_v59 = vmul.f32 %v1711_v28, %v2096_v5  ;;  %v2266_v23 = vmul.f32 %v2096_v5, %v1751_v8  ;;  %v2270_v32 = vmul.f32 %v1734_v51, %v2096_v5 }
 0x192   :  { %v2274_v19 = vmul.f32 %v1747_v2, %v2096_v5  ;;  %v2278_v28 = vmul.f32 %v2096_v5, %v1774_v35  ;;  %v2282_v58 = vmul.f32 %v2096_v5, %v1787_v48  ;;  %v2286_v8 = vmul.f32 %v1770_v29, %v2096_v5 }
 0x193   :  { %v2290_v51 = vmul.f32 %v1783_v44, %v2096_v5  ;;  %v2294_v2 = vmul.f32 %v2096_v5, %v1810_v22  ;;  %v2298_v35 = vmul.f32 %v2096_v5, %v1823_v46  ;;  %v2302_v48 = vmul.f32 %v1806_v15, %v2096_v5 }
 0x194   :  { %v2306_v29 = vmul.f32 %v1819_v38, %v2096_v5  ;;  %v2310_v44 = vmul.f32 %v2096_v5, %v1846_v41  ;;  %v2314_v22 = vmul.f32 %v2096_v5, %v1859_v9  ;;  %v2318_v46 = vmul.f32 %v1842_v20, %v2096_v5 }
 0x195   :  { %v2322_v15 = vmul.f32 %v1855_v60, %v2096_v5  ;;  %v2326_v38 = vmul.f32 %v2096_v5, %v1882_v11  ;;  %v2330_v41 = vmul.f32 %v2096_v5, %v1895_v49 }
 0x196   :  { %3013 = vst [vmem:[#allocation9_spill] sm:$0xff] %v2310_v44  ;;  %3014 = vst [vmem:[#allocation11_spill] sm:$0xff] %v2314_v22  ;;  %v3019_v44 = vld [vmem:[#allocation17_spill] sm:$0xff]  ;;  %v3021_v22 = vld [vmem:[#allocation20_spill] sm:$0xff] }
 0x197   :  { %3015 = vst [vmem:[#allocation8_spill] sm:$0xff] %v2318_v46  ;;  %3016 = vst [vmem:[#allocation10_spill] sm:$0xff] %v2322_v15  ;;  %v2334_v9 = vmul.f32 %v3019_v44, %v2096_v5  ;;  %v2338_v20 = vmul.f32 %v3021_v22, %v2096_v5  ;;  %v3023_v46 = vld [vmem:[#allocation23_spill] sm:$0xff]  ;;  %v3024_v15 = vld [vmem:[#allocation25_spill] sm:$0xff]  ;;  %v3028_v22 = vsub.f32 %v2090_v45, %v2092_v6 }
 0x198   :  { %3017 = vst [vmem:[#allocation13_spill] sm:$0xff] %v2326_v38  ;;  %3018 = vst [vmem:[#allocation15_spill] sm:$0xff] %v2330_v41  ;;  %v2342_v60 = vmul.f32 %v2096_v5, %v3023_v46  ;;  %v2346_v11 = vmul.f32 %v2096_v5, %v3024_v15  ;;  %v3025_v38 = vld [vmem:[#allocation22_spill] sm:$0xff]  ;;  %v3026_v41 = vld [vmem:[#allocation24_spill] sm:$0xff] }
 0x199   :  { %3020 = vst [vmem:[#allocation12_spill] sm:$0xff] %v2334_v9  ;;  %3022 = vst [vmem:[#allocation14_spill] sm:$0xff] %v2338_v20  ;;  %v2350_v49 = vmul.f32 %v3025_v38, %v2096_v5  ;;  %v2354_v44 = vmul.f32 %v3026_v41, %v2096_v5  ;;  %v3027_v9 = vsub.s32 0, %v2081_v4  ;;  %v3031_v41 = vld [vmem:[#allocation6_spill] sm:$0xff] }
 0x19b   :  { %v2361_v20 = vrot.slane %v3028_v22, %v3027_v9 }
 0x19d   :  { %v2365_v46 = vadd.f32 %v2361_v20, %v2102_v62  ;;  %v2369_v15 = vadd.f32 %v2361_v20, %v2106_v47  ;;  %v2373_v38 = vadd.f32 %v2361_v20, %v2110_v14  ;;  %v2377_v4 = vadd.f32 %v2361_v20, %v2114_v55 }
 0x19e   :  { %v2381_v45 = vadd.f32 %v2361_v20, %v2118_v12  ;;  %v2385_v6 = vadd.f32 %v2361_v20, %v2122_v37  ;;  %v2389_v5 = vadd.f32 %v2361_v20, %v2126_v40  ;;  %v2393_v62 = vadd.f32 %v2361_v20, %v2130_v36 }
 0x19f   :  { %v2397_v47 = vadd.f32 %v2361_v20, %v2134_v39  ;;  %v2401_v14 = vadd.f32 %v2361_v20, %v2138_v57  ;;  %v2405_v55 = vadd.f32 %v2361_v20, %v2142_v3  ;;  %v2409_v12 = vadd.f32 %v2361_v20, %v2146_v54 }
 0x1a0   :  { %v2413_v37 = vadd.f32 %v2361_v20, %v2150_v63  ;;  %v2417_v40 = vadd.f32 %v2361_v20, %v2154_v21  ;;  %v2421_v36 = vadd.f32 %v2361_v20, %v2158_v31  ;;  %v2425_v39 = vadd.f32 %v2361_v20, %v2162_v18 }
 0x1a1   :  { %v2429_v57 = vadd.f32 %v2361_v20, %v2166_v27  ;;  %v2433_v3 = vadd.f32 %v2361_v20, %v2170_v53  ;;  %v2437_v54 = vadd.f32 %v2361_v20, %v2174_v7  ;;  %v2441_v63 = vadd.f32 %v2361_v20, %v2178_v50  ;;  %v3029_v50 = vld [vmem:[#allocation7_spill] sm:$0xff] }
 0x1a2   :  { %v2445_v21 = vadd.f32 %v2361_v20, %v2182_v1  ;;  %v2449_v31 = vadd.f32 %v2361_v20, %v2186_v33  ;;  %v2453_v18 = vadd.f32 %v2361_v20, %v2190_v43  ;;  %v2457_v27 = vadd.f32 %v2361_v20, %v2194_v24  ;;  %v3030_v33 = vld [vmem:[#allocation5_spill] sm:$0xff] }
 0x1a3   :  { %v2461_v53 = vadd.f32 %v2361_v20, %v2198_v30  ;;  %v2465_v7 = vadd.f32 %v2361_v20, %v2202_v13  ;;  %v2469_v1 = vadd.f32 %v2361_v20, %v3029_v50  ;;  %v2473_v43 = vadd.f32 %v2361_v20, %v3030_v33  ;;  %v3036_v33 = vld [vmem:[#allocation9_spill] sm:$0xff] }
 0x1a4   :  { %v2477_v24 = vadd.f32 %v2361_v20, %v3031_v41  ;;  %v2481_v30 = vadd.f32 %v2361_v20, %v2218_v25  ;;  %v2485_v13 = vadd.f32 %v2361_v20, %v2222_v52  ;;  %v2489_v9 = vadd.f32 %v2361_v20, %v2226_v16  ;;  %v3038_v41 = vld [vmem:[#allocation11_spill] sm:$0xff] }
 0x1a5   :  { %v2493_v22 = vadd.f32 %v2361_v20, %v2230_v26  ;;  %v2497_v50 = vadd.f32 %v2361_v20, %v2234_v10  ;;  %v2501_v25 = vadd.f32 %v2361_v20, %v2238_v61  ;;  %v2505_v52 = vadd.f32 %v2361_v20, %v2242_v56 }
 0x1a6   :  { %v2509_v16 = vadd.f32 %v2361_v20, %v2246_v42  ;;  %v2513_v26 = vadd.f32 %v2361_v20, %v2250_v17  ;;  %v2517_v10 = vadd.f32 %v2361_v20, %v2254_v34  ;;  %v2521_v61 = vadd.f32 %v2361_v20, %v2258_v59 }
 0x1a7   :  { %v2525_v56 = vadd.f32 %v2361_v20, %v2262_v0  ;;  %v2529_v42 = vadd.f32 %v2361_v20, %v2266_v23  ;;  %v2533_v17 = vadd.f32 %v2361_v20, %v2270_v32  ;;  %v2537_v34 = vadd.f32 %v2361_v20, %v2274_v19 }
 0x1a8   :  { %v2541_v59 = vadd.f32 %v2361_v20, %v2278_v28  ;;  %v2545_v0 = vadd.f32 %v2361_v20, %v2282_v58  ;;  %v2549_v23 = vadd.f32 %v2361_v20, %v2286_v8  ;;  %v2553_v32 = vadd.f32 %v2361_v20, %v2290_v51 }
 0x1a9   :  { %v2557_v19 = vadd.f32 %v2361_v20, %v2294_v2  ;;  %v2561_v28 = vadd.f32 %v2361_v20, %v2298_v35  ;;  %v2565_v58 = vadd.f32 %v2361_v20, %v2302_v48  ;;  %v2569_v8 = vadd.f32 %v2361_v20, %v2306_v29 }
 0x1aa   :  { %v2573_v51 = vadd.f32 %v2361_v20, %v3036_v33  ;;  %v2577_v2 = vadd.f32 %v2361_v20, %v3038_v41 }
 0x1ab   :  { %3032 = vst [vmem:[#allocation18_spill] sm:$0xff] %v2557_v19  ;;  %3033 = vst [vmem:[#allocation21_spill] sm:$0xff] %v2561_v28  ;;  %v3040_v19 = vld [vmem:[#allocation8_spill] sm:$0xff]  ;;  %v3041_v28 = vld [vmem:[#allocation10_spill] sm:$0xff] }
 0x1ac   :  { %3034 = vst [vmem:[#allocation16_spill] sm:$0xff] %v2565_v58  ;;  %3035 = vst [vmem:[#allocation19_spill] sm:$0xff] %v2569_v8  ;;  %v2581_v35 = vadd.f32 %v2361_v20, %v3040_v19  ;;  %v2585_v48 = vadd.f32 %v2361_v20, %v3041_v28  ;;  %v3042_v58 = vld [vmem:[#allocation13_spill] sm:$0xff]  ;;  %v3043_v8 = vld [vmem:[#allocation15_spill] sm:$0xff]  ;;  %v2605_v28 = vadd.f32 %v2361_v20, %v2342_v60  ;;  %v1130_v60 = vmax.f32 %v2377_v4, 0.0 }
 0x1ad   :  { %3037 = vst [vmem:[#allocation3_spill] sm:$0xff] %v2573_v51  ;;  %3039 = vst [vmem:[#allocation4_spill] sm:$0xff] %v2577_v2  ;;  %v2589_v29 = vadd.f32 %v2361_v20, %v3042_v58  ;;  %v2593_v33 = vadd.f32 %v2361_v20, %v3043_v8  ;;  %v3044_v51 = vld [vmem:[#allocation12_spill] sm:$0xff]  ;;  %v3046_v2 = vld [vmem:[#allocation14_spill] sm:$0xff]  ;;  %v2609_v58 = vadd.f32 %v2361_v20, %v2346_v11  ;;  %v1132_v11 = vmax.f32 %v2385_v6, 0.0 }
 0x1ae   :  { %v2597_v41 = vadd.f32 %v2361_v20, %v3044_v51  ;;  %v2601_v19 = vadd.f32 %v2361_v20, %v3046_v2  ;;  %3048 = vst [vmem:[#allocation20_spill] sm:$0xff] %v2605_v28  ;;  %v2613_v8 = vadd.f32 %v2361_v20, %v2350_v49  ;;  %v2617_v51 = vadd.f32 %v2361_v20, %v2354_v44 }
 0x1af   :  { %3049 = vst [vmem:[#allocation23_spill] sm:$0xff] %v2609_v58  ;;  %v1128_v2 = vmax.f32 %v2369_v15, 0.0  ;;  %v1131_v28 = vmax.f32 %v2381_v45, 0.0  ;;  %v1133_v58 = vmax.f32 %v2389_v5, 0.0  ;;  %v1134_v49 = vmax.f32 %v2393_v62, 0.0  ;;  %1194 = vst.msk [vmem:[%s2942_s3 + $0x18] sm:$0xff] %vm649_vm2, %v1130_v60 }
 0x1b0   :  { %3045 = vst [vmem:[#allocation2_spill] sm:$0xff] %v2597_v41  ;;  %3047 = vst [vmem:[#allocation17_spill] sm:$0xff] %v2601_v19  ;;  %v1127_v41 = vmax.f32 %v2365_v46, 0.0  ;;  %v1129_v19 = vmax.f32 %v2373_v38, 0.0  ;;  %v1136_v20 = vmax.f32 %v2401_v14, 0.0  ;;  %v1137_v44 = vmax.f32 %v2405_v55, 0.0 }
 0x1b1   :  { %3050 = vst [vmem:[#allocation25_spill] sm:$0xff] %v2613_v8  ;;  %v1135_v8 = vmax.f32 %v2397_v47, 0.0  ;;  %v1138_v46 = vmax.f32 %v2409_v12, 0.0  ;;  %1192 = vst.msk [vmem:[%s2942_s3 + $0x8] sm:$0xff] %vm649_vm2, %v1128_v2  ;;  %v1139_v15 = vmax.f32 %v2413_v37, 0.0  ;;  %v1140_v38 = vmax.f32 %v2417_v40, 0.0 }
 0x1b2   :  { %1191 = vst.msk [vmem:[%s2942_s3] sm:$0xff] %vm649_vm2, %v1127_v41  ;;  %1193 = vst.msk [vmem:[%s2942_s3 + $0x10] sm:$0xff] %vm649_vm2, %v1129_v19  ;;  %v1141_v4 = vmax.f32 %v2421_v36, 0.0  ;;  %v1142_v45 = vmax.f32 %v2425_v39, 0.0  ;;  %v1143_v6 = vmax.f32 %v2429_v57, 0.0  ;;  %v1144_v5 = vmax.f32 %v2433_v3, 0.0 }
 0x1b3   :  { %1195 = vst.msk [vmem:[%s2942_s3 + $0x20] sm:$0xff] %vm649_vm2, %v1131_v28  ;;  %1196 = vst.msk [vmem:[%s2942_s3 + $0x28] sm:$0xff] %vm649_vm2, %v1132_v11  ;;  %v1145_v62 = vmax.f32 %v2437_v54, 0.0  ;;  %v1146_v47 = vmax.f32 %v2441_v63, 0.0  ;;  %v1147_v14 = vmax.f32 %v2445_v21, 0.0  ;;  %v1148_v55 = vmax.f32 %v2449_v31, 0.0 }
 0x1b4   :  { %1197 = vst.msk [vmem:[%s2942_s3 + $0x30] sm:$0xff] %vm649_vm2, %v1133_v58  ;;  %1198 = vst.msk [vmem:[%s2942_s3 + $0x38] sm:$0xff] %vm649_vm2, %v1134_v49  ;;  %v1149_v12 = vmax.f32 %v2453_v18, 0.0  ;;  %v1150_v37 = vmax.f32 %v2457_v27, 0.0  ;;  %v1151_v40 = vmax.f32 %v2461_v53, 0.0  ;;  %v1152_v36 = vmax.f32 %v2465_v7, 0.0 }
 0x1b5   :  { %1199 = vst.msk [vmem:[%s2942_s3 + $0x40] sm:$0xff] %vm649_vm2, %v1135_v8  ;;  %1200 = vst.msk [vmem:[%s2942_s3 + $0x48] sm:$0xff] %vm649_vm2, %v1136_v20  ;;  %v1153_v39 = vmax.f32 %v2469_v1, 0.0  ;;  %v1154_v57 = vmax.f32 %v2473_v43, 0.0  ;;  %v1155_v3 = vmax.f32 %v2477_v24, 0.0  ;;  %v1156_v54 = vmax.f32 %v2481_v30, 0.0 }
 0x1b6   :  { %1201 = vst.msk [vmem:[%s2942_s3 + $0x50] sm:$0xff] %vm649_vm2, %v1137_v44  ;;  %1202 = vst.msk [vmem:[%s2942_s3 + $0x58] sm:$0xff] %vm649_vm2, %v1138_v46  ;;  %v1157_v63 = vmax.f32 %v2485_v13, 0.0  ;;  %v1158_v21 = vmax.f32 %v2489_v9, 0.0  ;;  %v1159_v31 = vmax.f32 %v2493_v22, 0.0  ;;  %v1160_v18 = vmax.f32 %v2497_v50, 0.0 }
 0x1b7   :  { %1203 = vst.msk [vmem:[%s2942_s3 + $0x60] sm:$0xff] %vm649_vm2, %v1139_v15  ;;  %1204 = vst.msk [vmem:[%s2942_s3 + $0x68] sm:$0xff] %vm649_vm2, %v1140_v38  ;;  %v1161_v27 = vmax.f32 %v2501_v25, 0.0  ;;  %v1162_v53 = vmax.f32 %v2505_v52, 0.0  ;;  %v1163_v7 = vmax.f32 %v2509_v16, 0.0  ;;  %v1164_v1 = vmax.f32 %v2513_v26, 0.0 }
 0x1b8   :  { %1205 = vst.msk [vmem:[%s2942_s3 + $0x70] sm:$0xff] %vm649_vm2, %v1141_v4  ;;  %1206 = vst.msk [vmem:[%s2942_s3 + $0x78] sm:$0xff] %vm649_vm2, %v1142_v45  ;;  %v1165_v43 = vmax.f32 %v2517_v10, 0.0  ;;  %v1166_v24 = vmax.f32 %v2521_v61, 0.0  ;;  %v1167_v30 = vmax.f32 %v2525_v56, 0.0  ;;  %v1168_v13 = vmax.f32 %v2529_v42, 0.0 }
 0x1b9   :  { %1207 = vst.msk [vmem:[%s2942_s3 + $0x80] sm:$0xff] %vm649_vm2, %v1143_v6  ;;  %1208 = vst.msk [vmem:[%s2942_s3 + $0x88] sm:$0xff] %vm649_vm2, %v1144_v5  ;;  %v1169_v9 = vmax.f32 %v2533_v17, 0.0  ;;  %v1170_v22 = vmax.f32 %v2537_v34, 0.0  ;;  %v1171_v50 = vmax.f32 %v2541_v59, 0.0  ;;  %v1172_v25 = vmax.f32 %v2545_v0, 0.0 }
 0x1ba   :  { %1209 = vst.msk [vmem:[%s2942_s3 + $0x90] sm:$0xff] %vm649_vm2, %v1145_v62  ;;  %1210 = vst.msk [vmem:[%s2942_s3 + $0x98] sm:$0xff] %vm649_vm2, %v1146_v47  ;;  %v1173_v52 = vmax.f32 %v2549_v23, 0.0  ;;  %v1174_v16 = vmax.f32 %v2553_v32, 0.0  ;;  %v3051_v26 = vld [vmem:[#allocation18_spill] sm:$0xff]  ;;  %v3052_v61 = vld [vmem:[#allocation21_spill] sm:$0xff] }
 0x1bb   :  { %1211 = vst.msk [vmem:[%s2942_s3 + $0xa0] sm:$0xff] %vm649_vm2, %v1147_v14  ;;  %1212 = vst.msk [vmem:[%s2942_s3 + $0xa8] sm:$0xff] %vm649_vm2, %v1148_v55  ;;  %v1175_v10 = vmax.f32 %v3051_v26, 0.0  ;;  %v1176_v56 = vmax.f32 %v3052_v61, 0.0  ;;  %v3053_v42 = vld [vmem:[#allocation16_spill] sm:$0xff]  ;;  %v3054_v34 = vld [vmem:[#allocation19_spill] sm:$0xff] }
 0x1bc   :  { %1213 = vst.msk [vmem:[%s2942_s3 + $0xb0] sm:$0xff] %vm649_vm2, %v1149_v12  ;;  %1214 = vst.msk [vmem:[%s2942_s3 + $0xb8] sm:$0xff] %vm649_vm2, %v1150_v37  ;;  %v1177_v17 = vmax.f32 %v3053_v42, 0.0  ;;  %v1178_v59 = vmax.f32 %v3054_v34, 0.0  ;;  %v3055_v0 = vld [vmem:[#allocation3_spill] sm:$0xff]  ;;  %v3056_v32 = vld [vmem:[#allocation4_spill] sm:$0xff] }
 0x1bd   :  { %1215 = vst.msk [vmem:[%s2942_s3 + $0xc0] sm:$0xff] %vm649_vm2, %v1151_v40  ;;  %1216 = vst.msk [vmem:[%s2942_s3 + $0xc8] sm:$0xff] %vm649_vm2, %v1152_v36  ;;  %v1179_v23 = vmax.f32 %v3055_v0, 0.0  ;;  %v1180_v41 = vmax.f32 %v3056_v32, 0.0  ;;  %v1181_v19 = vmax.f32 %v2581_v35, 0.0  ;;  %v1182_v28 = vmax.f32 %v2585_v48, 0.0 }
 0x1be   :  { %1217 = vst.msk [vmem:[%s2942_s3 + $0xd0] sm:$0xff] %vm649_vm2, %v1153_v39  ;;  %1218 = vst.msk [vmem:[%s2942_s3 + $0xd8] sm:$0xff] %vm649_vm2, %v1154_v57  ;;  %v1183_v35 = vmax.f32 %v2589_v29, 0.0  ;;  %v1184_v48 = vmax.f32 %v2593_v33, 0.0  ;;  %v3057_v58 = vld [vmem:[#allocation2_spill] sm:$0xff]  ;;  %v3058_v2 = vld [vmem:[#allocation17_spill] sm:$0xff] }
 0x1bf   :  { %1219 = vst.msk [vmem:[%s2942_s3 + $0xe0] sm:$0xff] %vm649_vm2, %v1155_v3  ;;  %1220 = vst.msk [vmem:[%s2942_s3 + $0xe8] sm:$0xff] %vm649_vm2, %v1156_v54  ;;  %v1185_v8 = vmax.f32 %v3057_v58, 0.0  ;;  %v1186_v60 = vmax.f32 %v3058_v2, 0.0  ;;  %v3059_v29 = vld [vmem:[#allocation20_spill] sm:$0xff]  ;;  %v3060_v11 = vld [vmem:[#allocation23_spill] sm:$0xff] }
 0x1c0   :  { %1221 = vst.msk [vmem:[%s2942_s3 + $0xf0] sm:$0xff] %vm649_vm2, %v1157_v63  ;;  %1222 = vst.msk [vmem:[%s2942_s3 + $0xf8] sm:$0xff] %vm649_vm2, %v1158_v21  ;;  %v1187_v33 = vmax.f32 %v3059_v29, 0.0  ;;  %v1188_v49 = vmax.f32 %v3060_v11, 0.0  ;;  %v3061_v20 = vld [vmem:[#allocation25_spill] sm:$0xff]  ;;  %v1190_v46 = vmax.f32 %v2617_v51, 0.0 }
 0x1c1   :  { %1223 = vst.msk [vmem:[%s2942_s3 + $0x100] sm:$0xff] %vm649_vm2, %v1159_v31  ;;  %1224 = vst.msk [vmem:[%s2942_s3 + $0x108] sm:$0xff] %vm649_vm2, %v1160_v18  ;;  %v1189_v44 = vmax.f32 %v3061_v20, 0.0 }
 0x1c2   :  { %1225 = vst.msk [vmem:[%s2942_s3 + $0x110] sm:$0xff] %vm649_vm2, %v1161_v27  ;;  %1226 = vst.msk [vmem:[%s2942_s3 + $0x118] sm:$0xff] %vm649_vm2, %v1162_v53 }
 0x1c3   :  { %1227 = vst.msk [vmem:[%s2942_s3 + $0x120] sm:$0xff] %vm649_vm2, %v1163_v7  ;;  %1228 = vst.msk [vmem:[%s2942_s3 + $0x128] sm:$0xff] %vm649_vm2, %v1164_v1 }
 0x1c4   :  { %1229 = vst.msk [vmem:[%s2942_s3 + $0x130] sm:$0xff] %vm649_vm2, %v1165_v43  ;;  %1230 = vst.msk [vmem:[%s2942_s3 + $0x138] sm:$0xff] %vm649_vm2, %v1166_v24 }
 0x1c5   :  { %1231 = vst.msk [vmem:[%s2942_s3 + $0x140] sm:$0xff] %vm649_vm2, %v1167_v30  ;;  %1232 = vst.msk [vmem:[%s2942_s3 + $0x148] sm:$0xff] %vm649_vm2, %v1168_v13 }
 0x1c6   :  { %1233 = vst.msk [vmem:[%s2942_s3 + $0x150] sm:$0xff] %vm649_vm2, %v1169_v9  ;;  %1234 = vst.msk [vmem:[%s2942_s3 + $0x158] sm:$0xff] %vm649_vm2, %v1170_v22 }
 0x1c7   :  { %1235 = vst.msk [vmem:[%s2942_s3 + $0x160] sm:$0xff] %vm649_vm2, %v1171_v50  ;;  %1236 = vst.msk [vmem:[%s2942_s3 + $0x168] sm:$0xff] %vm649_vm2, %v1172_v25 }
 0x1c8   :  { %1237 = vst.msk [vmem:[%s2942_s3 + $0x170] sm:$0xff] %vm649_vm2, %v1173_v52  ;;  %1238 = vst.msk [vmem:[%s2942_s3 + $0x178] sm:$0xff] %vm649_vm2, %v1174_v16 }
 0x1c9   :  { %1239 = vst.msk [vmem:[%s2942_s3 + $0x180] sm:$0xff] %vm649_vm2, %v1175_v10  ;;  %1240 = vst.msk [vmem:[%s2942_s3 + $0x188] sm:$0xff] %vm649_vm2, %v1176_v56 }
 0x1ca   :  { %1241 = vst.msk [vmem:[%s2942_s3 + $0x190] sm:$0xff] %vm649_vm2, %v1177_v17  ;;  %1242 = vst.msk [vmem:[%s2942_s3 + $0x198] sm:$0xff] %vm649_vm2, %v1178_v59 }
 0x1cb   :  { %1243 = vst.msk [vmem:[%s2942_s3 + $0x1a0] sm:$0xff] %vm649_vm2, %v1179_v23  ;;  %1244 = vst.msk [vmem:[%s2942_s3 + $0x1a8] sm:$0xff] %vm649_vm2, %v1180_v41 }
 0x1cc   :  { %1245 = vst.msk [vmem:[%s2942_s3 + $0x1b0] sm:$0xff] %vm649_vm2, %v1181_v19  ;;  %1246 = vst.msk [vmem:[%s2942_s3 + $0x1b8] sm:$0xff] %vm649_vm2, %v1182_v28 }
 0x1cd   :  { %1247 = vst.msk [vmem:[%s2942_s3 + $0x1c0] sm:$0xff] %vm649_vm2, %v1183_v35  ;;  %1248 = vst.msk [vmem:[%s2942_s3 + $0x1c8] sm:$0xff] %vm649_vm2, %v1184_v48 }
 0x1ce   :  { %1249 = vst.msk [vmem:[%s2942_s3 + $0x1d0] sm:$0xff] %vm649_vm2, %v1185_v8  ;;  %1250 = vst.msk [vmem:[%s2942_s3 + $0x1d8] sm:$0xff] %vm649_vm2, %v1186_v60 }
 0x1cf   :  { %1251 = vst.msk [vmem:[%s2942_s3 + $0x1e0] sm:$0xff] %vm649_vm2, %v1187_v33  ;;  %1252 = vst.msk [vmem:[%s2942_s3 + $0x1e8] sm:$0xff] %vm649_vm2, %v1188_v49 }
 0x1d0   :  { %1253 = vst.msk [vmem:[%s2942_s3 + $0x1f0] sm:$0xff] %vm649_vm2, %v1189_v44  ;;  %1254 = vst.msk [vmem:[%s2942_s3 + $0x1f8] sm:$0xff] %vm649_vm2, %v1190_v46 }

</bundles_post_ra>
